<compile_context>
chip_gen: v7x
topology: tpu7x:2x2x1
jax: 0.10.0
libtpu: 0.0.40
codegen_flags: <defaults>
</compile_context>

<pallas_src>
import functools
import math

import jax
import jax.numpy as jnp
from jax.experimental import pallas as pl
from jax.experimental.pallas import tpu as pltpu


# --------------------------------------------------------------------------------------
# Generation-aware VMEM budgets
# --------------------------------------------------------------------------------------
def _vmem_capacity_bytes():
    try:
        info = pltpu.get_tpu_info()
        cap = getattr(info, "vmem_capacity_bytes", None)
        if cap:
            return int(cap)
    except Exception:
        pass
    return 128 * 1024 * 1024


_VMEM_CAP = _vmem_capacity_bytes()
# ~60% of physical VMEM: ~38 MiB on v7x (64 MiB), ~76 MiB on v5e/v6e (128 MiB).
_VMEM_LIMIT_BYTES = int(_VMEM_CAP * 0.6)
_VMEM_TILE_BUDGET = _VMEM_LIMIT_BYTES // 2

_MAX_TM = 1024
_MAX_TN = 512
_MAX_TK = 1024


def _round_down(x, m):
    return max(m, (x // m) * m)


def _compiler_params(dim_sem):
    return pltpu.CompilerParams(
        dimension_semantics=dim_sem, vmem_limit_bytes=_VMEM_LIMIT_BYTES)


# --------------------------------------------------------------------------------------
# LayerNorm kernel (torch semantics: unbiased std, eps added to std) — final Encoder.norm
# --------------------------------------------------------------------------------------
def _layernorm_kernel(x_ref, a_ref, b_ref, o_ref, *, eps, feat):
    x = x_ref[...].astype(jnp.float32)
    mean = jnp.mean(x, axis=-1, keepdims=True)
    diff = x - mean
    var = jnp.sum(diff * diff, axis=-1, keepdims=True) * jnp.float32(1.0 / (feat - 1))
    inv = pl.reciprocal(jnp.sqrt(var) + jnp.float32(eps), approx=False)
    a = a_ref[...].astype(jnp.float32)
    b = b_ref[...].astype(jnp.float32)
    o_ref[...] = (a * (diff * inv) + b).astype(o_ref.dtype)


def layer_norm_pallas(x, a_2, b_2, eps=1e-6):
    orig_shape = x.shape
    feat = orig_shape[-1]
    rows = math.prod(orig_shape[:-1]) if len(orig_shape) > 1 else 1
    x2 = x.reshape(rows, feat)

    per_row = 2 * 2 * feat * 4                       # in + out, double-buffered, f32
    tm = _round_down(max(8, min(_MAX_TM, _VMEM_TILE_BUDGET // per_row)), 8)
    if rows <= tm:
        tm = rows
    grid = (pl.cdiv(rows, tm),)

    out = pl.pallas_call(
        functools.partial(_layernorm_kernel, eps=eps, feat=feat),
        out_shape=jax.ShapeDtypeStruct((rows, feat), x.dtype),
        grid_spec=pltpu.PrefetchScalarGridSpec(
            num_scalar_prefetch=0,
            grid=grid,
            in_specs=[
                pl.BlockSpec((tm, feat), lambda i: (i, 0)),
                pl.BlockSpec((1, feat), lambda i: (0, 0)),
                pl.BlockSpec((1, feat), lambda i: (0, 0)),
            ],
            out_specs=pl.BlockSpec((tm, feat), lambda i: (i, 0)),
        ),
        compiler_params=_compiler_params(("parallel",)),
    )(x2, a_2.reshape(1, feat), b_2.reshape(1, feat))
    return out.reshape(orig_shape)


# --------------------------------------------------------------------------------------
# Fused QKV projection: one dot against [Wq | Wk | Wv], three outputs
# --------------------------------------------------------------------------------------
def _make_qkv_kernel(d_model, matmul_dtype):
    def kernel(x_ref, w_ref, b_ref, q_ref, k_ref, v_ref):
        y = jnp.dot(x_ref[...].astype(matmul_dtype), w_ref[...].astype(matmul_dtype),
                    preferred_element_type=jnp.float32) + b_ref[...].astype(jnp.float32)
        q_ref[...] = y[:, 0 * d_model:1 * d_model].astype(q_ref.dtype)
        k_ref[...] = y[:, 1 * d_model:2 * d_model].astype(k_ref.dtype)
        v_ref[...] = y[:, 2 * d_model:3 * d_model].astype(v_ref.dtype)
    return kernel


def qkv_projection_pallas(x2, wqkv, bqkv, *, matmul_dtype=jnp.bfloat16):
    rows, d_model = x2.shape
    d3 = wqkv.shape[1]

    fixed = 2 * 4 * (d_model * d3 + d3)              # resident weight + bias (dbl buf)
    per_row = 2 * 4 * (d_model + 3 * d_model)        # x tile + 3 output tiles (dbl buf)
    avail = max(_VMEM_TILE_BUDGET - fixed, 8 * per_row)
    tm = _round_down(max(8, min(_MAX_TM, avail // per_row)), 8)
    if rows <= tm:
        tm = rows
    grid = (pl.cdiv(rows, tm),)

    out_sd = jax.ShapeDtypeStruct((rows, d_model), x2.dtype)
    out_spec = lambda: pl.BlockSpec((tm, d_model), lambda i: (i, 0))

    return pl.pallas_call(
        _make_qkv_kernel(d_model, matmul_dtype),
        out_shape=(out_sd, out_sd, out_sd),
        grid_spec=pltpu.PrefetchScalarGridSpec(
            num_scalar_prefetch=0,
            grid=grid,
            in_specs=[
                pl.BlockSpec((tm, d_model), lambda i: (i, 0)),
                pl.BlockSpec((d_model, d3), lambda i: (0, 0)),
                pl.BlockSpec((1, d3), lambda i: (0, 0)),
            ],
            out_specs=[out_spec(), out_spec(), out_spec()],
        ),
        compiler_params=_compiler_params(("parallel",)),
    )(x2, wqkv, bqkv.reshape(1, d3))


# --------------------------------------------------------------------------------------
# General linear: y = x @ W + b (+ReLU) (+residual), M/N/K-tiled with f32 accumulator
# --------------------------------------------------------------------------------------
def _make_linear_kernel(activation, matmul_dtype, has_residual):
    def kernel(*refs):
        if has_residual:
            x_ref, w_ref, b_ref, r_ref, o_ref, acc_ref = refs
        else:
            x_ref, w_ref, b_ref, o_ref, acc_ref = refs
            r_ref = None
        k = pl.program_id(2)

        @pl.when(k == 0)
        def _():
            acc_ref[...] = jnp.zeros_like(acc_ref)

        acc_ref[...] += jnp.dot(x_ref[...].astype(matmul_dtype),
                                w_ref[...].astype(matmul_dtype),
                                preferred_element_type=jnp.float32)

        @pl.when(k == pl.num_programs(2) - 1)
        def _():
            y = acc_ref[...] + b_ref[...].astype(jnp.float32)
            if activation == "relu":
                y = jnp.maximum(y, 0.0)
            if r_ref is not None:
                y = y + r_ref[...].astype(jnp.float32)
            o_ref[...] = y.astype(o_ref.dtype)
    return kernel


def _pick_linear_tiles(rows, d_in, d_out):
    tn = d_out if d_out <= _MAX_TN else _round_down(_MAX_TN, 128)
    if d_in <= _MAX_TK:
        tk = d_in
    else:
        tk = d_in                                    # K tile must divide d_in exactly
        for cand in (1024, 512, 256, 128):
            if d_in % cand == 0:
                tk = cand
                break
    fixed = 2 * 4 * (tk * tn + tn)                   # weight tile + bias (dbl buf)
    per_row = 2 * 4 * (tk + 2 * tn) + 4 * tn         # x, out, residual (dbl buf) + acc
    avail = max(_VMEM_TILE_BUDGET - fixed, 8 * per_row)
    tm = _round_down(max(8, min(_MAX_TM, avail // per_row)), 8)
    if rows <= tm:
        tm = rows
    return tm, tn, tk


def linear_pallas(x2, w, b, *, activation=None, residual=None,
                  matmul_dtype=jnp.bfloat16):
    rows, d_in = x2.shape
    d_out = w.shape[1]
    tm, tn, tk = _pick_linear_tiles(rows, d_in, d_out)
    grid = (pl.cdiv(rows, tm), pl.cdiv(d_out, tn), d_in // tk)

    in_specs = [
        pl.BlockSpec((tm, tk), lambda i, j, k: (i, k)),
        pl.BlockSpec((tk, tn), lambda i, j, k: (k, j)),
        pl.BlockSpec((1, tn), lambda i, j, k: (0, j)),
    ]
    args = [x2, w, b.reshape(1, d_out)]
    if residual is not None:
        in_specs.append(pl.BlockSpec((tm, tn), lambda i, j, k: (i, j)))
        args.append(residual)

    return pl.pallas_call(
        _make_linear_kernel(activation, matmul_dtype, residual is not None),
        out_shape=jax.ShapeDtypeStruct((rows, d_out), x2.dtype),
        grid_spec=pltpu.PrefetchScalarGridSpec(
            num_scalar_prefetch=0,
            grid=grid,
            in_specs=in_specs,
            out_specs=pl.BlockSpec((tm, tn), lambda i, j, k: (i, j)),
            scratch_shapes=[pltpu.VMEM((tm, tn), jnp.float32)],
        ),
        compiler_params=_compiler_params(("parallel", "parallel", "arbitrary")),
    )(*args)


# --------------------------------------------------------------------------------------
# LayerNorm fused into the first FFN linear: relu(LN(x) @ W1 + b1)
# --------------------------------------------------------------------------------------
def _make_ln_linear_kernel(eps, feat, activation, matmul_dtype):
    def kernel(x_ref, ga_ref, gb_ref, w_ref, b_ref, o_ref):
        x = x_ref[...].astype(jnp.float32)
        mean = jnp.mean(x, axis=-1, keepdims=True)
        diff = x - mean
        var = jnp.sum(diff * diff, axis=-1, keepdims=True) * jnp.float32(1.0 / (feat - 1))
        inv = pl.reciprocal(jnp.sqrt(var) + jnp.float32(eps), approx=False)
        h = ga_ref[...].astype(jnp.float32) * (diff * inv) + gb_ref[...].astype(jnp.float32)
        y = jnp.dot(h.astype(matmul_dtype), w_ref[...].astype(matmul_dtype),
                    preferred_element_type=jnp.float32) + b_ref[...].astype(jnp.float32)
        if activation == "relu":
            y = jnp.maximum(y, 0.0)
        o_ref[...] = y.astype(o_ref.dtype)
    return kernel


def ln_linear_pallas(x2, ln_a, ln_b, w, b, *, eps=1e-6, activation=None,
                     matmul_dtype=jnp.bfloat16):
    rows, d_in = x2.shape
    d_out = w.shape[1]
    tn = d_out if d_out <= _MAX_TN else _round_down(_MAX_TN, 128)

    fixed = 2 * 4 * (d_in * tn + tn + 2 * d_in)      # weight tile + bias + LN params
    per_row = 2 * 4 * (d_in + tn)                    # x tile + out tile (dbl buf)
    avail = max(_VMEM_TILE_BUDGET - fixed, 8 * per_row)
    tm = _round_down(max(8, min(_MAX_TM, avail // per_row)), 8)
    if rows <= tm:
        tm = rows
    grid = (pl.cdiv(rows, tm), pl.cdiv(d_out, tn))

    return pl.pallas_call(
        _make_ln_linear_kernel(eps, d_in, activation, matmul_dtype),
        out_shape=jax.ShapeDtypeStruct((rows, d_out), x2.dtype),
        grid_spec=pltpu.PrefetchScalarGridSpec(
            num_scalar_prefetch=0,
            grid=grid,
            in_specs=[
                pl.BlockSpec((tm, d_in), lambda i, j: (i, 0)),
                pl.BlockSpec((1, d_in), lambda i, j: (0, 0)),
                pl.BlockSpec((1, d_in), lambda i, j: (0, 0)),
                pl.BlockSpec((d_in, tn), lambda i, j: (0, j)),
                pl.BlockSpec((1, tn), lambda i, j: (0, j)),
            ],
            out_specs=pl.BlockSpec((tm, tn), lambda i, j: (i, j)),
        ),
        compiler_params=_compiler_params(("parallel", "parallel")),
    )(x2, ln_a.reshape(1, d_in), ln_b.reshape(1, d_in), w, b.reshape(1, d_out))


# --------------------------------------------------------------------------------------
# Attention: per batch, all heads in-kernel, no host transposes.
# (The reference attention() never applies the mask, so none is applied here either.)
# --------------------------------------------------------------------------------------
def _attention_kernel(q_ref, k_ref, v_ref, o_ref, *, heads, d_k, scale, matmul_dtype):
    # q_ref/k_ref/v_ref/o_ref: (S, D) slab of one batch; head h lives in columns
    # [h*d_k, (h+1)*d_k) on both input and output — matching the torch view/transpose.
    q = q_ref[...]
    k = k_ref[...]
    v = v_ref[...]
    # TODO(synk): for long sequences (S >~ 1-2k) replace the full (S,S) scores tile with a
    # flash-style online-softmax loop over KV tiles to bound VMEM.
    for h in range(heads):
        sl = slice(h * d_k, (h + 1) * d_k)
        qh = q[:, sl].astype(matmul_dtype)
        kh = k[:, sl].astype(matmul_dtype)
        vh = v[:, sl].astype(matmul_dtype)
        s = jax.lax.dot_general(qh, kh, (((1,), (1,)), ((), ())),
                                preferred_element_type=jnp.float32) * jnp.float32(scale)
        s = s - jnp.max(s, axis=-1, keepdims=True)
        p = jnp.exp(s)
        p = p * pl.reciprocal(jnp.sum(p, axis=-1, keepdims=True), approx=True)
        o = jnp.dot(p.astype(matmul_dtype), vh, preferred_element_type=jnp.float32)
        o_ref[:, sl] = o.astype(o_ref.dtype)


def attention_pallas(q3, k3, v3, *, heads, matmul_dtype=jnp.bfloat16):
    """q3/k3/v3: (B, S, D) with heads interleaved along D -> (B, S, D)."""
    B, S, D = q3.shape
    d_k = D // heads
    scale = 1.0 / math.sqrt(d_k)
    spec = lambda: pl.BlockSpec((None, S, D), lambda b: (b, 0, 0))
    return pl.pallas_call(
        functools.partial(_attention_kernel, heads=heads, d_k=d_k, scale=scale,
                          matmul_dtype=matmul_dtype),
        out_shape=jax.ShapeDtypeStruct((B, S, D), q3.dtype),
        grid_spec=pltpu.PrefetchScalarGridSpec(
            num_scalar_prefetch=0,
            grid=(B,),
            in_specs=[spec(), spec(), spec()],
            out_specs=pl.BlockSpec((None, S, D), lambda b: (b, 0, 0)),
        ),
        compiler_params=_compiler_params(("parallel",)),
    )(q3, k3, v3)


# --------------------------------------------------------------------------------------
# Full Transformer encoder forward (Pallas) and pure-JAX reference
# --------------------------------------------------------------------------------------
def transformer_forward_pallas(x, params, *, heads, eps=1e-6, mask=None,
                               matmul_dtype=jnp.bfloat16):
    # TODO(synk): nn.Dropout layers are treated as identity (inference mode); `mask` is
    # accepted for API parity but the reference attention() never applies it.
    del mask
    B, S, D = x.shape
    rows = B * S
    x2 = x.reshape(rows, D)

    for layer in params["layers"]:
        # --- self-attention on raw x (sublayer[0]'s norm output is discarded) ---
        q2, k2, v2 = qkv_projection_pallas(x2, layer["wqkv"], layer["bqkv"],
                                           matmul_dtype=matmul_dtype)
        att = attention_pallas(q2.reshape(B, S, D), k2.reshape(B, S, D),
                               v2.reshape(B, S, D), heads=heads,
                               matmul_dtype=matmul_dtype)
        # output projection + residual, consumes the head-interleaved layout directly
        x2 = linear_pallas(att.reshape(rows, D), layer["wo"], layer["bo"],
                           residual=x2, matmul_dtype=matmul_dtype)

        # --- FFN: LN fused into W1 (+ReLU); residual fused into W2 ---
        h1 = ln_linear_pallas(x2, layer["ln_a"], layer["ln_b"], layer["w1"], layer["b1"],
                              eps=eps, activation="relu", matmul_dtype=matmul_dtype)
        x2 = linear_pallas(h1, layer["w2"], layer["b2"], residual=x2,
                           matmul_dtype=matmul_dtype)

    out = layer_norm_pallas(x2, params["norm_a"], params["norm_b"], eps=eps)
    return out.reshape(B, S, D)


def layer_norm_ref(x, a, b, eps=1e-6):
    x32 = x.astype(jnp.float32)
    mean = jnp.mean(x32, axis=-1, keepdims=True)
    var = jnp.sum((x32 - mean) ** 2, axis=-1, keepdims=True) / (x.shape[-1] - 1)
    std = jnp.sqrt(var)
    return (a * (x32 - mean) / (std + eps) + b).astype(x.dtype)


def transformer_forward_ref(x, params, *, heads, eps=1e-6):
    B, S, D = x.shape
    d_k = D // heads
    for layer in params["layers"]:
        qkv = x @ layer["wqkv"] + layer["bqkv"]
        q, k, v = qkv[..., :D], qkv[..., D:2 * D], qkv[..., 2 * D:]

        def split(t):
            return t.reshape(B, S, heads, d_k).transpose(0, 2, 1, 3)

        qh, kh, vh = split(q), split(k), split(v)
        scores = jnp.einsum("bhqd,bhkd->bhqk", qh, kh) / math.sqrt(d_k)
        p = jax.nn.softmax(scores, axis=-1)
        att = jnp.einsum("bhqk,bhkd->bhqd", p, vh)
        att = att.transpose(0, 2, 1, 3).reshape(B, S, D)
        x = x + (att @ layer["wo"] + layer["bo"])
        h = layer_norm_ref(x, layer["ln_a"], layer["ln_b"], eps)
        ff = jnp.maximum(h @ layer["w1"] + layer["b1"], 0.0) @ layer["w2"] + layer["b2"]
        x = x + ff
    return layer_norm_ref(x, params["norm_a"], params["norm_b"], eps)


def init_params(key, n_layers, d_model, d_ff):
    layers = []
    for i in range(n_layers):
        ks = jax.random.split(jax.random.fold_in(key, i), 12)

        def lin(kw, kb, din, dout):
            w = jax.random.normal(kw, (din, dout), jnp.float32) / jnp.sqrt(jnp.float32(din))
            b = jax.random.normal(kb, (dout,), jnp.float32) * 0.02
            return w, b

        wq, bq = lin(ks[0], ks[1], d_model, d_model)
        wk, bk = lin(ks[2], ks[3], d_model, d_model)
        wv, bv = lin(ks[4], ks[5], d_model, d_model)
        wo, bo = lin(ks[6], ks[7], d_model, d_model)
        w1, b1 = lin(ks[8], ks[9], d_model, d_ff)
        w2, b2 = lin(ks[10], ks[11], d_ff, d_model)
        layers.append(dict(
            wqkv=jnp.concatenate([wq, wk, wv], axis=1),     # fused [Wq | Wk | Wv]
            bqkv=jnp.concatenate([bq, bk, bv], axis=0),
            wo=wo, bo=bo, w1=w1, b1=b1, w2=w2, b2=b2,
            ln_a=jnp.ones((d_model,), jnp.float32),          # nn.Parameter(torch.ones)
            ln_b=jnp.zeros((d_model,), jnp.float32),         # nn.Parameter(torch.zeros)
        ))
    return dict(layers=layers,
                norm_a=jnp.ones((d_model,), jnp.float32),
                norm_b=jnp.zeros((d_model,), jnp.float32))


if __name__ == "__main__":
    key = jax.random.PRNGKey(0)
    # small shapes consistent with the module (d_model % heads == 0 is required by the spec)
    batch, seq, d_model, heads, d_ff, n_layers = 2, 8, 32, 4, 64, 2

    kx, kp = jax.random.split(key)
    x = jax.random.normal(kx, (batch, seq, d_model), dtype=jnp.float32)
    params = init_params(kp, n_layers, d_model, d_ff)

    # tight-tolerance check of the standalone LayerNorm kernel
    ln_out = jax.block_until_ready(layer_norm_pallas(x, params["norm_a"], params["norm_b"]))
    ln_ref = layer_norm_ref(x, params["norm_a"], params["norm_b"])
    assert jnp.allclose(ln_out, ln_ref, atol=1e-5, rtol=1e-5), "layernorm mismatch"

    ref = transformer_forward_ref(x, params, heads=heads)

    # semantics check with f32 MXU operands (tolerance absorbs MXU default-precision and
    # the approx-reciprocal softmax denominator only)
    out_f32 = jax.block_until_ready(
        transformer_forward_pallas(x, params, heads=heads, matmul_dtype=jnp.float32))
    assert out_f32.shape == x.shape and out_f32.dtype == x.dtype
    assert jnp.allclose(out_f32, ref, atol=2e-2, rtol=2e-2), \
        float(jnp.max(jnp.abs(out_f32 - ref)))

    # fast path: bf16 MXU operands (f32 accumulate / f32 elementwise). Looser tolerance
    # covers bf16 operand rounding across the stacked matmuls vs the f32 reference.
    out = jax.block_until_ready(transformer_forward_pallas(x, params, heads=heads))
    assert out.shape == x.shape and out.dtype == x.dtype
    assert jnp.allclose(out, ref, atol=5e-2, rtol=5e-2), float(jnp.max(jnp.abs(out - ref)))

    print("KERNEL_OK")
</pallas_src>

<mosaic_0001>
module attributes {stable_mosaic.version = 11 : i64} {
  func.func @_layernorm_kernel(%arg0: i32, %arg1: memref<16x32xf32, #tpu.memory_space<vmem>>, %arg2: memref<1x32xf32, #tpu.memory_space<vmem>>, %arg3: memref<1x32xf32, #tpu.memory_space<vmem>>, %arg4: memref<16x32xf32, #tpu.memory_space<vmem>>) attributes {dimension_semantics = [#tpu.dimension_semantics<parallel>], iteration_bounds = array<i64: 1>, scalar_prefetch = 0 : i64, scratch_operands = 0 : i64, tpu.core_type = #tpu.core_type<tc>, window_params = [{transform_indices = @transform_0, window_bounds = array<i64: 16, 32>}, {pipeline_mode = #tpu.pipeline_mode<synchronous>, transform_indices = @transform_1, window_bounds = array<i64: 1, 32>}, {pipeline_mode = #tpu.pipeline_mode<synchronous>, transform_indices = @transform_2, window_bounds = array<i64: 1, 32>}, {transform_indices = @transform_3, window_bounds = array<i64: 16, 32>}]} {
    %c0 = arith.constant 0 : index
    %c0_0 = arith.constant 0 : index
    %0 = vector.load %arg1[%c0, %c0_0] : memref<16x32xf32, #tpu.memory_space<vmem>>, vector<16x32xf32>
    %cst = arith.constant dense<0.000000e+00> : vector<16xf32>
    %1 = vector.multi_reduction <add>, %0, %cst [1] : vector<16x32xf32> to vector<16xf32>
    %2 = vector.shape_cast %1 : vector<16xf32> to vector<16x1xf32>
    %cst_1 = arith.constant 3.200000e+01 : f32
    %3 = vector.broadcast %cst_1 : f32 to vector<16x1xf32>
    %4 = arith.divf %2, %3 : vector<16x1xf32>
    %5 = vector.broadcast %4 : vector<16x1xf32> to vector<16x32xf32>
    %6 = arith.subf %0, %5 : vector<16x32xf32>
    %7 = arith.mulf %6, %6 : vector<16x32xf32>
    %cst_2 = arith.constant dense<0.000000e+00> : vector<16xf32>
    %8 = vector.multi_reduction <add>, %7, %cst_2 [1] : vector<16x32xf32> to vector<16xf32>
    %9 = vector.shape_cast %8 : vector<16xf32> to vector<16x1xf32>
    %cst_3 = arith.constant 0.0322580636 : f32
    %10 = vector.broadcast %cst_3 : f32 to vector<16x1xf32>
    %11 = arith.mulf %9, %10 : vector<16x1xf32>
    %12 = math.sqrt %11 : vector<16x1xf32>
    %cst_4 = arith.constant 9.99999997E-7 : f32
    %13 = vector.broadcast %cst_4 : f32 to vector<16x1xf32>
    %14 = arith.addf %12, %13 : vector<16x1xf32>
    %15 = tpu.reciprocal %14 : vector<16x1xf32> -> vector<16x1xf32>
    %c0_5 = arith.constant 0 : index
    %c0_6 = arith.constant 0 : index
    %16 = vector.load %arg2[%c0_5, %c0_6] : memref<1x32xf32, #tpu.memory_space<vmem>>, vector<1x32xf32>
    %c0_7 = arith.constant 0 : index
    %c0_8 = arith.constant 0 : index
    %17 = vector.load %arg3[%c0_7, %c0_8] : memref<1x32xf32, #tpu.memory_space<vmem>>, vector<1x32xf32>
    %18 = vector.broadcast %15 : vector<16x1xf32> to vector<16x32xf32>
    %19 = arith.mulf %6, %18 : vector<16x32xf32>
    %20 = vector.broadcast %16 : vector<1x32xf32> to vector<16x32xf32>
    %21 = arith.mulf %20, %19 : vector<16x32xf32>
    %22 = vector.broadcast %17 : vector<1x32xf32> to vector<16x32xf32>
    %23 = arith.addf %21, %22 : vector<16x32xf32>
    %c0_9 = arith.constant 0 : index
    %c0_10 = arith.constant 0 : index
    %24 = vector.load %arg4[%c0_9, %c0_10] : memref<16x32xf32, #tpu.memory_space<vmem>>, vector<16x32xf32>
    tpu.vector_store %arg4[%c0_9, %c0_10], %23 {strides = array<i32>} : memref<16x32xf32, #tpu.memory_space<vmem>>, vector<16x32xf32>,
    return
  }
  func.func @transform_0(%arg0: i32) -> (i32, i32) {
    %c0_i32 = arith.constant 0 : i32
    %c0_i32_0 = arith.constant 0 : i32
    return %arg0, %c0_i32 : i32, i32
  }
  func.func @transform_1(%arg0: i32) -> (i32, i32) {
    %c0_i32 = arith.constant 0 : i32
    %c0_i32_0 = arith.constant 0 : i32
    %c0_i32_1 = arith.constant 0 : i32
    return %c0_i32, %c0_i32_0 : i32, i32
  }
  func.func @transform_2(%arg0: i32) -> (i32, i32) {
    %c0_i32 = arith.constant 0 : i32
    %c0_i32_0 = arith.constant 0 : i32
    %c0_i32_1 = arith.constant 0 : i32
    return %c0_i32, %c0_i32_0 : i32, i32
  }
  func.func @transform_3(%arg0: i32) -> (i32, i32) {
    %c0_i32 = arith.constant 0 : i32
    %c0_i32_0 = arith.constant 0 : i32
    return %arg0, %c0_i32 : i32, i32
  }
}

</mosaic_0001>

<bundles_post_ra>
// kernel: tpu_custom_call.1
= control target key start
LH: loop header
LB: loop body
LE: loop exit
PB: predicated region body
PF: predicated region fallthrough
CT: control target
= control target key end

     0   :  { %8 = vsyncpa [#allocation3], 0  ;;  %s337_s0 = inlined_call_operand.hbm [shape: f32[16,32], index: 0, kind: input, shape index: {}]   ;;  %s338_s1 = inlined_call_operand.hbm [shape: f32[1,32], index: 1, kind: input, shape index: {}]   ;;  %s339_s2 = inlined_call_operand.hbm [shape: f32[1,32], index: 2, kind: input, shape index: {}]   ;;  %s340_s3 = inlined_call_operand.hbm [shape: f32[16,32], index: 3, kind: output, shape index: {}]  }
   0x1   :  { %9 = vsyncpa [#allocation6], 0 }
   0x2   :  { %10 = vsyncpa [#allocation4], 0  ;;  %s244_s12 = smov [#allocation5]   ;;  %s245_s14 = smov [#allocation2]  }
   0x3   :  { %s29_s13 = sshll.u32 %s244_s12, 4  ;;  %s16_s15 = sshll.u32 %s245_s14, 4  ;;  %s30_s13 = int_to_ptr.vmem [resolvable:$true] %s29_s13  ;;  %s270_s15 = int_to_ptr.vmem [resolvable:$true] %s16_s15 }
   0x4   :  { %s150_s18 = scalar_lea.hbm %s338_s1, 16 }
   0x5   :  { %p151_p0 = scmp.ne.s32.totalorder %s338_s1, %s150_s18  ;;  %p154_p1 = scmp.lt.u32.totalorder %s150_s18, %s338_s1 }
   0x7   :  { %p156_p2 = pnand %p154_p1, %p151_p0 }
   0x9   :  { %159 = shalt.err (!%p156_p2)
}
   0xa   :  { %s160_s23 = scalar_lea.vmem %s30_s13, 16  ;;  %s164_s24 = scalar_lea.vmem %s30_s13, 32 }
   0xb   :  { %p161_p3 = scmp.ne.s32.totalorder %s30_s13, %s160_s23  ;;  %p165_p4 = scmp.lt.s32.totalorder %s30_s13, %s30_s13 }
   0xc   :  { %p166_p5 = scmp.lt.s32.totalorder %s164_s24, %s160_s23 }
   0xe   :  { %p167_p6 = por %p166_p5, %p165_p4 }
  0x10   :  { %p168_p7 = pnand %p167_p6, %p161_p3 }
  0x12   :  { %171 = shalt.err (!%p168_p7)
}
  0x13   :  { %32 = dma.hbm_to_vmem [thread:$0]  %s338_s1, 16, %s30_s13, [#allocation6]  }
  0x14   :  { %s172_s29 = scalar_lea.hbm %s337_s0, 256 }
  0x15   :  { %p173_p8 = scmp.ne.s32.totalorder %s337_s0, %s172_s29  ;;  %p176_p9 = scmp.lt.u32.totalorder %s172_s29, %s337_s0 }
  0x17   :  { %p178_p10 = pnand %p176_p9, %p173_p8 }
  0x19   :  { %181 = shalt.err (!%p178_p10)
}
  0x1a   :  { %s182_s7 = scalar_lea.vmem %s270_s15, 256  ;;  %p187_p12 = scmp.lt.s32.totalorder %s270_s15, %s270_s15 }
  0x1b   :  { %p183_p11 = scmp.ne.s32.totalorder %s270_s15, %s182_s7  ;;  %p188_p13 = scmp.lt.s32.totalorder %s182_s7, %s182_s7 }
  0x1d   :  { %p189_p0 = por %p188_p13, %p187_p12 }
  0x1f   :  { %p190_p1 = pnand %p189_p0, %p183_p11 }
  0x21   :  { %193 = shalt.err (!%p190_p1)
}
  0x22   :  { %s246_s1 = smov 128   ;;  %s247_s8 = smov 8  }
  0x23   :  { %22 = dma.hbm_to_vmem [thread:$0]  %s337_s0, 256, %s270_s15, [#allocation3], %s246_s1, %s246_s1, %s247_s8  }
  0x24   :  { %s248_s11 = smov [#allocation7]   ;;  %s194_s16 = scalar_lea.hbm %s339_s2, 16 }
  0x25   :  { %s39_s12 = sshll.u32 %s248_s11, 4  ;;  %p195_p2 = scmp.ne.s32.totalorder %s339_s2, %s194_s16  ;;  %s40_s12 = int_to_ptr.vmem [resolvable:$true] %s39_s12 }
  0x26   :  { %p198_p3 = scmp.lt.u32.totalorder %s194_s16, %s339_s2 }
  0x28   :  { %p200_p4 = pnand %p198_p3, %p195_p2 }
  0x2a   :  { %203 = shalt.err (!%p200_p4)
}
  0x2b   :  { %s204_s21 = scalar_lea.vmem %s40_s12, 16  ;;  %s208_s0 = scalar_lea.vmem %s40_s12, 32 }
  0x2c   :  { %p205_p5 = scmp.ne.s32.totalorder %s40_s12, %s204_s21  ;;  %p209_p6 = scmp.lt.s32.totalorder %s40_s12, %s40_s12 }
  0x2d   :  { %p210_p7 = scmp.lt.s32.totalorder %s208_s0, %s204_s21 }
  0x2f   :  { %p211_p8 = por %p210_p7, %p209_p6 }
  0x31   :  { %p212_p9 = pnand %p211_p8, %p205_p5 }
  0x33   :  { %215 = shalt.err (!%p212_p9)
}
  0x34   :  { %42 = dma.hbm_to_vmem [thread:$0]  %s339_s2, 16, %s40_s12, [#allocation6]  }
  0x35   :  { %238 = dma.done.wait [#allocation3], 256  }
  0x36   :  { %239 = vsyncadd [#allocation3], 4294967040 }
  0x37   :  { %240 = dma.done.wait [#allocation6], 32  }
  0x38   :  { %241 = vsyncadd [#allocation6], 4294967264  ;;  %vm54_vm0 = vcmask 261120   ;;  %v52_v0 = vld [vmem:[#allocation2] sm:$0xff]  ;;  %v53_v1 = vld [vmem:[#allocation2 + $0x8] sm:$0xff]  ;;  %s249_s2 = smov [#allocation8]  }
  0x39   :  { %v55_v2 = vsel %vm54_vm0, %v52_v0, 0.0  ;;  %v58_v3 = vsel %vm54_vm0, %v53_v1, 0.0  ;;  %v134_v31 = vld [vmem:[#allocation5] ss:$0 sm:$0xff]  ;;  %v135_v33 = vld [vmem:[#allocation7] ss:$0 sm:$0xff] }
  0x3a   :  { %56 = vadd.xlane.f32.xlu0 %v55_v2  ;;  %s121_s23 = sshll.u32 %s249_s2, 4  ;;  %s122_s23 = int_to_ptr.vmem [resolvable:$true] %s121_s23 }
  0x3b   :  { %s216_s24 = scalar_lea.vmem %s122_s23, 256  ;;  %p221_p11 = scmp.lt.s32.totalorder %s122_s23, %s122_s23 }
  0x3c   :  { %p217_p10 = scmp.ne.s32.totalorder %s122_s23, %s216_s24  ;;  %p222_p12 = scmp.lt.s32.totalorder %s216_s24, %s216_s24 }
  0x3e   :  { %59 = vadd.xlane.f32.xlu0 %v58_v3  ;;  %p223_p13 = por %p222_p12, %p221_p11 }
  0x40   :  { %p224_p0 = pnand %p223_p13, %p217_p10 }
  0xc7   :  { %v57_v4 = vpop.xlane.xlu0 %56 }
  0xc8   :  { %v62_v5 = vmul.f32 0.03125, %v57_v4 }
  0xca   :  { %v64_v6 = vsub.f32 %v52_v0, %v62_v5 }
  0xcb   :  { %v60_v7 = vpop.xlane.xlu0 %59 }
  0xcc   :  { %v63_v8 = vmul.f32 0.03125, %v60_v7  ;;  %v66_v9 = vmul.f32 %v64_v6, %v64_v6 }
  0xce   :  { %v65_v10 = vsub.f32 %v53_v1, %v63_v8  ;;  %v68_v11 = vsel %vm54_vm0, %v66_v9, 0.0 }
  0xcf   :  { %69 = vadd.xlane.f32.xlu1 %v68_v11 }
  0xd0   :  { %v67_v12 = vmul.f32 %v65_v10, %v65_v10 }
  0xd2   :  { %v71_v13 = vsel %vm54_vm0, %v67_v12, 0.0 }
  0xd3   :  { %72 = vadd.xlane.f32.xlu1 %v71_v13 }
 0x15c   :  { %v70_v14 = vpop.xlane.xlu1 %69 }
 0x15d   :  { %v74_v15 = vmul.f32 0.032258064, %v70_v14 }
 0x15f   :  { %142 = vrsqrt.f32 %v74_v15  ;;  %vm78_vm1 = vcmp.eq.f32.partialorder %v74_v15, inf  ;;  %v81_v20 = vand.u32 2147483648, %v74_v15  ;;  %vm80_vm2 = vcmp.eq.f32.partialorder %v74_v15, 0.0 }
 0x160   :  { %v73_v16 = vpop.xlane.xlu1 %72 }
 0x161   :  { %v75_v17 = vmul.f32 0.032258064, %v73_v16 }
 0x163   :  { %144 = vrsqrt.f32 %v75_v17  ;;  %vm85_vm3 = vcmp.eq.f32.partialorder %v75_v17, inf  ;;  %v88_v26 = vand.u32 2147483648, %v75_v17  ;;  %vm87_vm4 = vcmp.eq.f32.partialorder %v75_v17, 0.0 }
 0x169   :  { %v143_v18 = vpop.eup %142 }
 0x16a   :  { %v77_v19 = vmul.f32 %v143_v18, %v74_v15 }
 0x16c   :  { %v79_v21 = vsel %vm78_vm1, %v74_v15, %v77_v19 }
 0x16d   :  { %v145_v22 = vpop.eup %144  ;;  %v82_v23 = vsel %vm80_vm2, %v81_v20, %v79_v21 }
 0x16e   :  { %v90_v24 = vadd.f32 1e-06, %v82_v23  ;;  %v84_v25 = vmul.f32 %v145_v22, %v75_v17 }
 0x170   :  { %146 = vrcp.f32 %v90_v24  ;;  %v86_v27 = vsel %vm85_vm3, %v75_v17, %v84_v25 }
 0x171   :  { %v89_v28 = vsel %vm87_vm4, %v88_v26, %v86_v27 }
 0x172   :  { %v91_v29 = vadd.f32 1e-06, %v89_v28 }
 0x174   :  { %148 = vrcp.f32 %v91_v29 }
 0x17a   :  { %v147_v30 = vpop.eup %146 }
 0x17b   :  { %v96_v32 = vmul.f32 %v147_v30, %v64_v6 }
 0x17d   :  { %v104_v34 = vmul.f32 %v134_v31, %v96_v32 }
 0x17e   :  { %v149_v35 = vpop.eup %148 }
 0x17f   :  { %v97_v36 = vmul.f32 %v149_v35, %v65_v10  ;;  %v112_v37 = vadd.f32 %v135_v33, %v104_v34 }
 0x181   :  { %v105_v38 = vmul.f32 %v134_v31, %v97_v36  ;;  %114 = vst.msk [vmem:[#allocation8] sm:$0xff] %vm54_vm0, %v112_v37 }
 0x183   :  { %v113_v39 = vadd.f32 %v135_v33, %v105_v38 }
 0x185   :  { %115 = vst.msk [vmem:[#allocation8 + $0x8] sm:$0xff] %vm54_vm0, %v113_v39 }
 0x186   :  { %227 = shalt.err (!%p224_p0)
}
 0x187   :  { %s228_s27 = scalar_lea.hbm %s340_s3, 256 }
 0x188   :  { %p229_p1 = scmp.ne.s32.totalorder %s340_s3, %s228_s27  ;;  %p232_p2 = scmp.lt.u32.totalorder %s228_s27, %s340_s3 }
 0x18a   :  { %p234_p3 = pnand %p232_p2, %p229_p1 }
 0x18c   :  { %237 = shalt.err (!%p234_p3)
}
 0x18d   :  { %127 = dma.vmem_to_hbm [thread:$0]  %s122_s23, 256, %s340_s3, [#allocation4], %s246_s1, %s246_s1, %s247_s8  }
 0x18e   :  { %242 = dma.done.wait [#allocation4], 256  }
 0x18f   :  { %243 = vsyncadd [#allocation4], 4294967040 }
 0x190   :  { %131 = vsyncpa [#allocation3], 1 }
 0x191   :  { %132 = vsyncpa [#allocation6], 1 }
 0x192   :  { %133 = vsyncpa [#allocation4], 1 }

</bundles_post_ra>
